<compile_context>
chip_gen: v7x
topology: tpu7x:2x2x1
jax: 0.10.0
libtpu: 0.0.40
codegen_flags: <defaults>
</compile_context>

<pallas_src>
import jax
import jax.numpy as jnp
from jax import lax
from jax.experimental import pallas as pl
from jax.experimental.pallas import tpu as pltpu


def _round_up(x, m):
    return ((x + m - 1) // m) * m


def ode_kernel(dt_ref, temb_ref, y0_ref, w1_ref, w2_ref, b2_ref, xf_ref, z_ref):
    """Integrates the augmented ODE (x, z) with explicit Euler for one batch tile.

    dt_ref   : SMEM f32[T-1]          per-step dt
    temb_ref : VMEM f32[T-1, 1, H]    precomputed t_k*wt + b1
    y0_ref   : VMEM f32[TB, D]        initial states (batch tile)
    w1_ref   : VMEM mxu[D, H]
    w2_ref   : VMEM mxu[H, D]
    b2_ref   : VMEM f32[1, D]
    xf_ref   : VMEM f32[TB, D]        final states x(t_T)
    z_ref    : VMEM f32[TB, 128]      transport cost, broadcast across lanes
    """
    num_steps = dt_ref.shape[0]

    x0 = y0_ref[...]                  # (TB, D) f32 state carry
    w1 = w1_ref[...]                  # (D, H)  MXU operand dtype (bf16 default)
    w2 = w2_ref[...]                  # (H, D)
    b2 = b2_ref[...]                  # (1, D)  f32

    def func(k, x):
        # velocity field: tanh(x @ W1 + (t_k*wt + b1)) @ W2 + b2   -> (TB, D)
        temb_k = temb_ref[k]          # (1, H) precomputed time conditioning
        h = jnp.tanh(
            jnp.dot(x.astype(w1.dtype), w1, preferred_element_type=jnp.float32)
            + temb_k)
        return jnp.dot(h.astype(w2.dtype), w2,
                       preferred_element_type=jnp.float32) + b2

    def euler_step(k, carry):
        x, z = carry
        dt = dt_ref[k]                                             # SMEM scalar
        dxdt = func(k, x)                                          # dx/dt
        dzdt = 0.5 * jnp.sum(dxdt * dxdt, axis=-1, keepdims=True)  # 0.5*||dxdt||^2
        return (x + dt * dxdt, z + dt * dzdt)

    z0 = jnp.zeros((x0.shape[0], 1), jnp.float32)
    x_final, z_final = lax.fori_loop(0, num_steps, euler_step, (x0, z0),
                                     unroll=True)

    xf_ref[...] = x_final.astype(xf_ref.dtype)
    # Lane-dense cost store: broadcast (TB,1) -> (TB,128); wrapper reads col 0.
    z_ref[...] = jnp.broadcast_to(z_final, z_ref.shape).astype(z_ref.dtype)


def coordinate_flow_ode(y0, ts, params, *, block_b=256, mxu_dtype=jnp.bfloat16):
    """Batched __call__(y0, ts) with method='euler'.

    Returns (final_states (B, D), transport_cost (B,)).
    mxu_dtype: operand dtype fed to the MXU matmuls (accumulation and the x/z
               state stay f32). Pass jnp.float32 to disable the bf16 fast path.
    """
    w1, b1, wt, w2, b2 = params
    B, D = y0.shape
    H = w1.shape[1]
    T = ts.shape[0]

    ts = ts.astype(jnp.float32)
    # Per-step quantities computed once, outside the serial critical path.
    dt = ts[1:] - ts[:-1]                                   # (T-1,)     -> SMEM
    temb = (ts[:-1, None] * wt + b1).astype(jnp.float32)    # (T-1, H)
    temb = temb.reshape(T - 1, 1, H)                        # major-dim indexable

    w1_c = w1.astype(mxu_dtype)
    w2_c = w2.astype(mxu_dtype)
    b2_c = b2.astype(jnp.float32)
    y0_c = y0.astype(jnp.float32)

    # Batch tiling: TB rows per grid step (multiple of 8 sublanes, <= block_b).
    TB = min(_round_up(B, 8), _round_up(block_b, 8))
    n_blocks = pl.cdiv(B, TB)
    B_pad = n_blocks * TB
    if B_pad != B:
        y0_c = jnp.zeros((B_pad, D), jnp.float32).at[:B].set(y0_c)

    # Explicit VMEM budget: double-buffered y0/xf/z tiles + resident constants,
    # plus generous headroom; capped well under v7x's 64 MiB physical VMEM.
    bpe = 4
    tile_bytes = TB * D * bpe
    z_bytes = TB * 128 * bpe
    const_bytes = ((D * H + H * D) * jnp.dtype(mxu_dtype).itemsize
                   + ((T - 1) * H + D + H) * bpe)
    vmem_limit = 4 * (2 * tile_bytes + 2 * (tile_bytes + z_bytes) + const_bytes)
    vmem_limit = int(min(max(vmem_limit + (8 << 20), 16 << 20), 48 << 20))

    xf, z = pl.pallas_call(
        ode_kernel,
        out_shape=(
            jax.ShapeDtypeStruct((B_pad, D), jnp.float32),
            jax.ShapeDtypeStruct((B_pad, 128), jnp.float32),
        ),
        grid=(n_blocks,),
        in_specs=[
            pl.BlockSpec(memory_space=pltpu.MemorySpace.SMEM),       # dt
            pl.BlockSpec((T - 1, 1, H), lambda i: (0, 0, 0)),        # temb
            pl.BlockSpec((TB, D), lambda i: (i, 0)),                 # y0 tile
            pl.BlockSpec((D, H), lambda i: (0, 0)),                  # w1
            pl.BlockSpec((H, D), lambda i: (0, 0)),                  # w2
            pl.BlockSpec((1, D), lambda i: (0, 0)),                  # b2
        ],
        out_specs=(
            pl.BlockSpec((TB, D), lambda i: (i, 0)),                 # xf tile
            pl.BlockSpec((TB, 128), lambda i: (i, 0)),               # cost (lane-dense)
        ),
        compiler_params=pltpu.CompilerParams(
            dimension_semantics=("parallel",),   # shards batch grid over 2 TCs on v7x
            vmem_limit_bytes=vmem_limit,
        ),
    )(dt, temb, y0_c, w1_c, w2_c, b2_c)

    return xf[:B], z[:B, 0]


def coordinate_flow_ode_ref(y0, ts, params, mxu_dtype=jnp.float32):
    """Pure-JAX reference of the forward semantics.

    mxu_dtype=jnp.bfloat16 mirrors the kernel's MXU-operand precision (state,
    accumulation, tanh input and the cost reduction stay f32 in both cases).
    """
    w1, b1, wt, w2, b2 = params

    def func(t, x):
        h = jnp.tanh(
            jnp.dot(x.astype(mxu_dtype), w1.astype(mxu_dtype),
                    preferred_element_type=jnp.float32,
                    precision=lax.Precision.HIGHEST) + t * wt + b1)
        return jnp.dot(h.astype(mxu_dtype), w2.astype(mxu_dtype),
                       preferred_element_type=jnp.float32,
                       precision=lax.Precision.HIGHEST) + b2

    x = y0.astype(jnp.float32)
    z = jnp.zeros((y0.shape[0],), jnp.float32)
    for k in range(ts.shape[0] - 1):
        t_k = ts[k]
        dt = ts[k + 1] - ts[k]
        dxdt = func(t_k, x)
        dzdt = 0.5 * jnp.sum(dxdt * dxdt, axis=-1)
        x = x + dt * dxdt
        z = z + dt * dzdt
    return x, z


if __name__ == "__main__":
    B, D, H, T = 8, 32, 64, 8

    key = jax.random.PRNGKey(0)
    k_y0, k_w1, k_b1, k_wt, k_w2, k_b2 = jax.random.split(key, 6)

    y0 = jax.random.normal(k_y0, (B, D), jnp.float32)
    ts = jnp.linspace(0.0, 1.0, T).astype(jnp.float32)

    scale1 = 1.0 / jnp.sqrt(jnp.float32(D))
    scale2 = 1.0 / jnp.sqrt(jnp.float32(H))
    params = (
        jax.random.normal(k_w1, (D, H), jnp.float32) * scale1,   # W1
        jax.random.normal(k_b1, (1, H), jnp.float32) * 0.1,      # b1
        jax.random.normal(k_wt, (1, H), jnp.float32) * 0.1,      # wt (time embed)
        jax.random.normal(k_w2, (H, D), jnp.float32) * scale2,   # W2
        jax.random.normal(k_b2, (1, D), jnp.float32) * 0.1,      # b2
    )

    xf, cost = jax.block_until_ready(coordinate_flow_ode(y0, ts, params))
    assert xf.shape == (B, D) and cost.shape == (B,)

    # (1) Kernel logic vs precision-matched reference (bf16 MXU operands,
    #     f32 state/accumulation) -- tight tolerance.
    xf_m, cost_m = coordinate_flow_ode_ref(y0, ts, params, mxu_dtype=jnp.bfloat16)
    assert jnp.allclose(xf, xf_m, atol=2e-3, rtol=2e-3)
    assert jnp.allclose(cost, cost_m, atol=2e-3, rtol=2e-3)

    # (2) Module semantics vs the full-f32 reference -- tolerance reflects the
    #     bf16 rounding of the MXU operands only.
    xf_f, cost_f = coordinate_flow_ode_ref(y0, ts, params, mxu_dtype=jnp.float32)
    assert jnp.allclose(xf, xf_f, atol=5e-2, rtol=5e-2)
    assert jnp.allclose(cost, cost_f, atol=5e-2, rtol=5e-2)

    print("KERNEL_OK")
</pallas_src>

<mosaic_0001>
module attributes {stable_mosaic.version = 11 : i64} {
  func.func @ode_kernel(%arg0: i32, %arg1: memref<7xf32, #tpu.memory_space<smem>>, %arg2: memref<7x1x64xf32, #tpu.memory_space<vmem>>, %arg3: memref<8x32xf32, #tpu.memory_space<vmem>>, %arg4: memref<32x64xbf16, #tpu.memory_space<vmem>>, %arg5: memref<64x32xbf16, #tpu.memory_space<vmem>>, %arg6: memref<1x32xf32, #tpu.memory_space<vmem>>, %arg7: memref<8x32xf32, #tpu.memory_space<vmem>>, %arg8: memref<8x128xf32, #tpu.memory_space<vmem>>) attributes {dimension_semantics = [#tpu.dimension_semantics<parallel>], iteration_bounds = array<i64: 1>, scalar_prefetch = 0 : i64, scratch_operands = 0 : i64, tpu.core_type = #tpu.core_type<tc>, window_params = [{transform_indices = @transform_0, window_bounds = array<i64: 7>}, {pipeline_mode = #tpu.pipeline_mode<synchronous>, transform_indices = @transform_1, window_bounds = array<i64: 7, 1, 64>}, {transform_indices = @transform_2, window_bounds = array<i64: 8, 32>}, {pipeline_mode = #tpu.pipeline_mode<synchronous>, transform_indices = @transform_3, window_bounds = array<i64: 32, 64>}, {pipeline_mode = #tpu.pipeline_mode<synchronous>, transform_indices = @transform_4, window_bounds = array<i64: 64, 32>}, {pipeline_mode = #tpu.pipeline_mode<synchronous>, transform_indices = @transform_5, window_bounds = array<i64: 1, 32>}, {transform_indices = @transform_6, window_bounds = array<i64: 8, 32>}, {transform_indices = @transform_7, window_bounds = array<i64: 8, 128>}]} {
    %c0 = arith.constant 0 : index
    %c0_0 = arith.constant 0 : index
    %0 = vector.load %arg3[%c0, %c0_0] : memref<8x32xf32, #tpu.memory_space<vmem>>, vector<8x32xf32>
    %c0_1 = arith.constant 0 : index
    %c0_2 = arith.constant 0 : index
    %1 = vector.load %arg4[%c0_1, %c0_2] : memref<32x64xbf16, #tpu.memory_space<vmem>>, vector<32x64xbf16>
    %c0_3 = arith.constant 0 : index
    %c0_4 = arith.constant 0 : index
    %2 = vector.load %arg5[%c0_3, %c0_4] : memref<64x32xbf16, #tpu.memory_space<vmem>>, vector<64x32xbf16>
    %c0_5 = arith.constant 0 : index
    %c0_6 = arith.constant 0 : index
    %3 = vector.load %arg6[%c0_5, %c0_6] : memref<1x32xf32, #tpu.memory_space<vmem>>, vector<1x32xf32>
    %cst = arith.constant 0.000000e+00 : f32
    %4 = vector.broadcast %cst : f32 to vector<8x1xf32>
    %c0_i32 = arith.constant 0 : i32
    %5 = arith.index_cast %c0_i32 : i32 to index
    %6 = memref.load %arg1[%5] : memref<7xf32, #tpu.memory_space<smem>>
    %7 = arith.index_cast %c0_i32 : i32 to index
    %c0_7 = arith.constant 0 : index
    %c0_8 = arith.constant 0 : index
    %8 = vector.load %arg2[%7, %c0_7, %c0_8] : memref<7x1x64xf32, #tpu.memory_space<vmem>>, vector<1x1x64xf32>
    %9 = vector.shape_cast %8 : vector<1x1x64xf32> to vector<1x64xf32>
    %10 = arith.truncf %0 : vector<8x32xf32> to vector<8x32xbf16>
    %cst_9 = arith.constant dense<0.000000e+00> : vector<8x64xf32>
    %11 = tpu.matmul %10, %1, %cst_9 {dimension_numbers = #tpu.dot_dimension_numbers<[1], [0], [0], [1], [0, 0, 1, 1], [], []>} : vector<8x32xbf16>, vector<32x64xbf16>, vector<8x64xf32> -> vector<8x64xf32>
    %12 = vector.broadcast %9 : vector<1x64xf32> to vector<8x64xf32>
    %13 = arith.addf %11, %12 : vector<8x64xf32>
    %14 = math.tanh %13 : vector<8x64xf32>
    %15 = arith.truncf %14 : vector<8x64xf32> to vector<8x64xbf16>
    %cst_10 = arith.constant dense<0.000000e+00> : vector<8x32xf32>
    %16 = tpu.matmul %15, %2, %cst_10 {dimension_numbers = #tpu.dot_dimension_numbers<[1], [0], [0], [1], [0, 0, 1, 1], [], []>} : vector<8x64xbf16>, vector<64x32xbf16>, vector<8x32xf32> -> vector<8x32xf32>
    %17 = vector.broadcast %3 : vector<1x32xf32> to vector<8x32xf32>
    %18 = arith.addf %16, %17 : vector<8x32xf32>
    %19 = arith.mulf %18, %18 : vector<8x32xf32>
    %cst_11 = arith.constant dense<0.000000e+00> : vector<8xf32>
    %20 = vector.multi_reduction <add>, %19, %cst_11 [1] : vector<8x32xf32> to vector<8xf32>
    %21 = vector.shape_cast %20 : vector<8xf32> to vector<8x1xf32>
    %cst_12 = arith.constant 5.000000e-01 : f32
    %22 = vector.broadcast %cst_12 : f32 to vector<8x1xf32>
    %23 = arith.mulf %22, %21 : vector<8x1xf32>
    %24 = vector.broadcast %6 : f32 to vector<8x32xf32>
    %25 = arith.mulf %24, %18 : vector<8x32xf32>
    %26 = arith.addf %0, %25 : vector<8x32xf32>
    %27 = vector.broadcast %6 : f32 to vector<8x1xf32>
    %28 = arith.mulf %27, %23 : vector<8x1xf32>
    %29 = arith.addf %4, %28 : vector<8x1xf32>
    %c1_i32 = arith.constant 1 : i32
    %30 = arith.index_cast %c1_i32 : i32 to index
    %31 = memref.load %arg1[%30] : memref<7xf32, #tpu.memory_space<smem>>
    %32 = arith.index_cast %c1_i32 : i32 to index
    %c0_13 = arith.constant 0 : index
    %c0_14 = arith.constant 0 : index
    %33 = vector.load %arg2[%32, %c0_13, %c0_14] : memref<7x1x64xf32, #tpu.memory_space<vmem>>, vector<1x1x64xf32>
    %34 = vector.shape_cast %33 : vector<1x1x64xf32> to vector<1x64xf32>
    %35 = arith.truncf %26 : vector<8x32xf32> to vector<8x32xbf16>
    %cst_15 = arith.constant dense<0.000000e+00> : vector<8x64xf32>
    %36 = tpu.matmul %35, %1, %cst_15 {dimension_numbers = #tpu.dot_dimension_numbers<[1], [0], [0], [1], [0, 0, 1, 1], [], []>} : vector<8x32xbf16>, vector<32x64xbf16>, vector<8x64xf32> -> vector<8x64xf32>
    %37 = vector.broadcast %34 : vector<1x64xf32> to vector<8x64xf32>
    %38 = arith.addf %36, %37 : vector<8x64xf32>
    %39 = math.tanh %38 : vector<8x64xf32>
    %40 = arith.truncf %39 : vector<8x64xf32> to vector<8x64xbf16>
    %cst_16 = arith.constant dense<0.000000e+00> : vector<8x32xf32>
    %41 = tpu.matmul %40, %2, %cst_16 {dimension_numbers = #tpu.dot_dimension_numbers<[1], [0], [0], [1], [0, 0, 1, 1], [], []>} : vector<8x64xbf16>, vector<64x32xbf16>, vector<8x32xf32> -> vector<8x32xf32>
    %42 = vector.broadcast %3 : vector<1x32xf32> to vector<8x32xf32>
    %43 = arith.addf %41, %42 : vector<8x32xf32>
    %44 = arith.mulf %43, %43 : vector<8x32xf32>
    %cst_17 = arith.constant dense<0.000000e+00> : vector<8xf32>
    %45 = vector.multi_reduction <add>, %44, %cst_17 [1] : vector<8x32xf32> to vector<8xf32>
    %46 = vector.shape_cast %45 : vector<8xf32> to vector<8x1xf32>
    %cst_18 = arith.constant 5.000000e-01 : f32
    %47 = vector.broadcast %cst_18 : f32 to vector<8x1xf32>
    %48 = arith.mulf %47, %46 : vector<8x1xf32>
    %49 = vector.broadcast %31 : f32 to vector<8x32xf32>
    %50 = arith.mulf %49, %43 : vector<8x32xf32>
    %51 = arith.addf %26, %50 : vector<8x32xf32>
    %52 = vector.broadcast %31 : f32 to vector<8x1xf32>
    %53 = arith.mulf %52, %48 : vector<8x1xf32>
    %54 = arith.addf %29, %53 : vector<8x1xf32>
    %c2_i32 = arith.constant 2 : i32
    %55 = arith.index_cast %c2_i32 : i32 to index
    %56 = memref.load %arg1[%55] : memref<7xf32, #tpu.memory_space<smem>>
    %57 = arith.index_cast %c2_i32 : i32 to index
    %c0_19 = arith.constant 0 : index
    %c0_20 = arith.constant 0 : index
    %58 = vector.load %arg2[%57, %c0_19, %c0_20] : memref<7x1x64xf32, #tpu.memory_space<vmem>>, vector<1x1x64xf32>
    %59 = vector.shape_cast %58 : vector<1x1x64xf32> to vector<1x64xf32>
    %60 = arith.truncf %51 : vector<8x32xf32> to vector<8x32xbf16>
    %cst_21 = arith.constant dense<0.000000e+00> : vector<8x64xf32>
    %61 = tpu.matmul %60, %1, %cst_21 {dimension_numbers = #tpu.dot_dimension_numbers<[1], [0], [0], [1], [0, 0, 1, 1], [], []>} : vector<8x32xbf16>, vector<32x64xbf16>, vector<8x64xf32> -> vector<8x64xf32>
    %62 = vector.broadcast %59 : vector<1x64xf32> to vector<8x64xf32>
    %63 = arith.addf %61, %62 : vector<8x64xf32>
    %64 = math.tanh %63 : vector<8x64xf32>
    %65 = arith.truncf %64 : vector<8x64xf32> to vector<8x64xbf16>
    %cst_22 = arith.constant dense<0.000000e+00> : vector<8x32xf32>
    %66 = tpu.matmul %65, %2, %cst_22 {dimension_numbers = #tpu.dot_dimension_numbers<[1], [0], [0], [1], [0, 0, 1, 1], [], []>} : vector<8x64xbf16>, vector<64x32xbf16>, vector<8x32xf32> -> vector<8x32xf32>
    %67 = vector.broadcast %3 : vector<1x32xf32> to vector<8x32xf32>
    %68 = arith.addf %66, %67 : vector<8x32xf32>
    %69 = arith.mulf %68, %68 : vector<8x32xf32>
    %cst_23 = arith.constant dense<0.000000e+00> : vector<8xf32>
    %70 = vector.multi_reduction <add>, %69, %cst_23 [1] : vector<8x32xf32> to vector<8xf32>
    %71 = vector.shape_cast %70 : vector<8xf32> to vector<8x1xf32>
    %cst_24 = arith.constant 5.000000e-01 : f32
    %72 = vector.broadcast %cst_24 : f32 to vector<8x1xf32>
    %73 = arith.mulf %72, %71 : vector<8x1xf32>
    %74 = vector.broadcast %56 : f32 to vector<8x32xf32>
    %75 = arith.mulf %74, %68 : vector<8x32xf32>
    %76 = arith.addf %51, %75 : vector<8x32xf32>
    %77 = vector.broadcast %56 : f32 to vector<8x1xf32>
    %78 = arith.mulf %77, %73 : vector<8x1xf32>
    %79 = arith.addf %54, %78 : vector<8x1xf32>
    %c3_i32 = arith.constant 3 : i32
    %80 = arith.index_cast %c3_i32 : i32 to index
    %81 = memref.load %arg1[%80] : memref<7xf32, #tpu.memory_space<smem>>
    %82 = arith.index_cast %c3_i32 : i32 to index
    %c0_25 = arith.constant 0 : index
    %c0_26 = arith.constant 0 : index
    %83 = vector.load %arg2[%82, %c0_25, %c0_26] : memref<7x1x64xf32, #tpu.memory_space<vmem>>, vector<1x1x64xf32>
    %84 = vector.shape_cast %83 : vector<1x1x64xf32> to vector<1x64xf32>
    %85 = arith.truncf %76 : vector<8x32xf32> to vector<8x32xbf16>
    %cst_27 = arith.constant dense<0.000000e+00> : vector<8x64xf32>
    %86 = tpu.matmul %85, %1, %cst_27 {dimension_numbers = #tpu.dot_dimension_numbers<[1], [0], [0], [1], [0, 0, 1, 1], [], []>} : vector<8x32xbf16>, vector<32x64xbf16>, vector<8x64xf32> -> vector<8x64xf32>
    %87 = vector.broadcast %84 : vector<1x64xf32> to vector<8x64xf32>
    %88 = arith.addf %86, %87 : vector<8x64xf32>
    %89 = math.tanh %88 : vector<8x64xf32>
    %90 = arith.truncf %89 : vector<8x64xf32> to vector<8x64xbf16>
    %cst_28 = arith.constant dense<0.000000e+00> : vector<8x32xf32>
    %91 = tpu.matmul %90, %2, %cst_28 {dimension_numbers = #tpu.dot_dimension_numbers<[1], [0], [0], [1], [0, 0, 1, 1], [], []>} : vector<8x64xbf16>, vector<64x32xbf16>, vector<8x32xf32> -> vector<8x32xf32>
    %92 = vector.broadcast %3 : vector<1x32xf32> to vector<8x32xf32>
    %93 = arith.addf %91, %92 : vector<8x32xf32>
    %94 = arith.mulf %93, %93 : vector<8x32xf32>
    %cst_29 = arith.constant dense<0.000000e+00> : vector<8xf32>
    %95 = vector.multi_reduction <add>, %94, %cst_29 [1] : vector<8x32xf32> to vector<8xf32>
    %96 = vector.shape_cast %95 : vector<8xf32> to vector<8x1xf32>
    %cst_30 = arith.constant 5.000000e-01 : f32
    %97 = vector.broadcast %cst_30 : f32 to vector<8x1xf32>
    %98 = arith.mulf %97, %96 : vector<8x1xf32>
    %99 = vector.broadcast %81 : f32 to vector<8x32xf32>
    %100 = arith.mulf %99, %93 : vector<8x32xf32>
    %101 = arith.addf %76, %100 : vector<8x32xf32>
    %102 = vector.broadcast %81 : f32 to vector<8x1xf32>
    %103 = arith.mulf %102, %98 : vector<8x1xf32>
    %104 = arith.addf %79, %103 : vector<8x1xf32>
    %c4_i32 = arith.constant 4 : i32
    %105 = arith.index_cast %c4_i32 : i32 to index
    %106 = memref.load %arg1[%105] : memref<7xf32, #tpu.memory_space<smem>>
    %107 = arith.index_cast %c4_i32 : i32 to index
    %c0_31 = arith.constant 0 : index
    %c0_32 = arith.constant 0 : index
    %108 = vector.load %arg2[%107, %c0_31, %c0_32] : memref<7x1x64xf32, #tpu.memory_space<vmem>>, vector<1x1x64xf32>
    %109 = vector.shape_cast %108 : vector<1x1x64xf32> to vector<1x64xf32>
    %110 = arith.truncf %101 : vector<8x32xf32> to vector<8x32xbf16>
    %cst_33 = arith.constant dense<0.000000e+00> : vector<8x64xf32>
    %111 = tpu.matmul %110, %1, %cst_33 {dimension_numbers = #tpu.dot_dimension_numbers<[1], [0], [0], [1], [0, 0, 1, 1], [], []>} : vector<8x32xbf16>, vector<32x64xbf16>, vector<8x64xf32> -> vector<8x64xf32>
    %112 = vector.broadcast %109 : vector<1x64xf32> to vector<8x64xf32>
    %113 = arith.addf %111, %112 : vector<8x64xf32>
    %114 = math.tanh %113 : vector<8x64xf32>
    %115 = arith.truncf %114 : vector<8x64xf32> to vector<8x64xbf16>
    %cst_34 = arith.constant dense<0.000000e+00> : vector<8x32xf32>
    %116 = tpu.matmul %115, %2, %cst_34 {dimension_numbers = #tpu.dot_dimension_numbers<[1], [0], [0], [1], [0, 0, 1, 1], [], []>} : vector<8x64xbf16>, vector<64x32xbf16>, vector<8x32xf32> -> vector<8x32xf32>
    %117 = vector.broadcast %3 : vector<1x32xf32> to vector<8x32xf32>
    %118 = arith.addf %116, %117 : vector<8x32xf32>
    %119 = arith.mulf %118, %118 : vector<8x32xf32>
    %cst_35 = arith.constant dense<0.000000e+00> : vector<8xf32>
    %120 = vector.multi_reduction <add>, %119, %cst_35 [1] : vector<8x32xf32> to vector<8xf32>
    %121 = vector.shape_cast %120 : vector<8xf32> to vector<8x1xf32>
    %cst_36 = arith.constant 5.000000e-01 : f32
    %122 = vector.broadcast %cst_36 : f32 to vector<8x1xf32>
    %123 = arith.mulf %122, %121 : vector<8x1xf32>
    %124 = vector.broadcast %106 : f32 to vector<8x32xf32>
    %125 = arith.mulf %124, %118 : vector<8x32xf32>
    %126 = arith.addf %101, %125 : vector<8x32xf32>
    %127 = vector.broadcast %106 : f32 to vector<8x1xf32>
    %128 = arith.mulf %127, %123 : vector<8x1xf32>
    %129 = arith.addf %104, %128 : vector<8x1xf32>
    %c5_i32 = arith.constant 5 : i32
    %130 = arith.index_cast %c5_i32 : i32 to index
    %131 = memref.load %arg1[%130] : memref<7xf32, #tpu.memory_space<smem>>
    %132 = arith.index_cast %c5_i32 : i32 to index
    %c0_37 = arith.constant 0 : index
    %c0_38 = arith.constant 0 : index
    %133 = vector.load %arg2[%132, %c0_37, %c0_38] : memref<7x1x64xf32, #tpu.memory_space<vmem>>, vector<1x1x64xf32>
    %134 = vector.shape_cast %133 : vector<1x1x64xf32> to vector<1x64xf32>
    %135 = arith.truncf %126 : vector<8x32xf32> to vector<8x32xbf16>
    %cst_39 = arith.constant dense<0.000000e+00> : vector<8x64xf32>
    %136 = tpu.matmul %135, %1, %cst_39 {dimension_numbers = #tpu.dot_dimension_numbers<[1], [0], [0], [1], [0, 0, 1, 1], [], []>} : vector<8x32xbf16>, vector<32x64xbf16>, vector<8x64xf32> -> vector<8x64xf32>
    %137 = vector.broadcast %134 : vector<1x64xf32> to vector<8x64xf32>
    %138 = arith.addf %136, %137 : vector<8x64xf32>
    %139 = math.tanh %138 : vector<8x64xf32>
    %140 = arith.truncf %139 : vector<8x64xf32> to vector<8x64xbf16>
    %cst_40 = arith.constant dense<0.000000e+00> : vector<8x32xf32>
    %141 = tpu.matmul %140, %2, %cst_40 {dimension_numbers = #tpu.dot_dimension_numbers<[1], [0], [0], [1], [0, 0, 1, 1], [], []>} : vector<8x64xbf16>, vector<64x32xbf16>, vector<8x32xf32> -> vector<8x32xf32>
    %142 = vector.broadcast %3 : vector<1x32xf32> to vector<8x32xf32>
    %143 = arith.addf %141, %142 : vector<8x32xf32>
    %144 = arith.mulf %143, %143 : vector<8x32xf32>
    %cst_41 = arith.constant dense<0.000000e+00> : vector<8xf32>
    %145 = vector.multi_reduction <add>, %144, %cst_41 [1] : vector<8x32xf32> to vector<8xf32>
    %146 = vector.shape_cast %145 : vector<8xf32> to vector<8x1xf32>
    %cst_42 = arith.constant 5.000000e-01 : f32
    %147 = vector.broadcast %cst_42 : f32 to vector<8x1xf32>
    %148 = arith.mulf %147, %146 : vector<8x1xf32>
    %149 = vector.broadcast %131 : f32 to vector<8x32xf32>
    %150 = arith.mulf %149, %143 : vector<8x32xf32>
    %151 = arith.addf %126, %150 : vector<8x32xf32>
    %152 = vector.broadcast %131 : f32 to vector<8x1xf32>
    %153 = arith.mulf %152, %148 : vector<8x1xf32>
    %154 = arith.addf %129, %153 : vector<8x1xf32>
    %c6_i32 = arith.constant 6 : i32
    %155 = arith.index_cast %c6_i32 : i32 to index
    %156 = memref.load %arg1[%155] : memref<7xf32, #tpu.memory_space<smem>>
    %157 = arith.index_cast %c6_i32 : i32 to index
    %c0_43 = arith.constant 0 : index
    %c0_44 = arith.constant 0 : index
    %158 = vector.load %arg2[%157, %c0_43, %c0_44] : memref<7x1x64xf32, #tpu.memory_space<vmem>>, vector<1x1x64xf32>
    %159 = vector.shape_cast %158 : vector<1x1x64xf32> to vector<1x64xf32>
    %160 = arith.truncf %151 : vector<8x32xf32> to vector<8x32xbf16>
    %cst_45 = arith.constant dense<0.000000e+00> : vector<8x64xf32>
    %161 = tpu.matmul %160, %1, %cst_45 {dimension_numbers = #tpu.dot_dimension_numbers<[1], [0], [0], [1], [0, 0, 1, 1], [], []>} : vector<8x32xbf16>, vector<32x64xbf16>, vector<8x64xf32> -> vector<8x64xf32>
    %162 = vector.broadcast %159 : vector<1x64xf32> to vector<8x64xf32>
    %163 = arith.addf %161, %162 : vector<8x64xf32>
    %164 = math.tanh %163 : vector<8x64xf32>
    %165 = arith.truncf %164 : vector<8x64xf32> to vector<8x64xbf16>
    %cst_46 = arith.constant dense<0.000000e+00> : vector<8x32xf32>
    %166 = tpu.matmul %165, %2, %cst_46 {dimension_numbers = #tpu.dot_dimension_numbers<[1], [0], [0], [1], [0, 0, 1, 1], [], []>} : vector<8x64xbf16>, vector<64x32xbf16>, vector<8x32xf32> -> vector<8x32xf32>
    %167 = vector.broadcast %3 : vector<1x32xf32> to vector<8x32xf32>
    %168 = arith.addf %166, %167 : vector<8x32xf32>
    %169 = arith.mulf %168, %168 : vector<8x32xf32>
    %cst_47 = arith.constant dense<0.000000e+00> : vector<8xf32>
    %170 = vector.multi_reduction <add>, %169, %cst_47 [1] : vector<8x32xf32> to vector<8xf32>
    %171 = vector.shape_cast %170 : vector<8xf32> to vector<8x1xf32>
    %cst_48 = arith.constant 5.000000e-01 : f32
    %172 = vector.broadcast %cst_48 : f32 to vector<8x1xf32>
    %173 = arith.mulf %172, %171 : vector<8x1xf32>
    %174 = vector.broadcast %156 : f32 to vector<8x32xf32>
    %175 = arith.mulf %174, %168 : vector<8x32xf32>
    %176 = arith.addf %151, %175 : vector<8x32xf32>
    %177 = vector.broadcast %156 : f32 to vector<8x1xf32>
    %178 = arith.mulf %177, %173 : vector<8x1xf32>
    %179 = arith.addf %154, %178 : vector<8x1xf32>
    %c7_i32 = arith.constant 7 : i32
    %c0_49 = arith.constant 0 : index
    %c0_50 = arith.constant 0 : index
    %180 = vector.load %arg7[%c0_49, %c0_50] : memref<8x32xf32, #tpu.memory_space<vmem>>, vector<8x32xf32>
    tpu.vector_store %arg7[%c0_49, %c0_50], %176 {strides = array<i32>} : memref<8x32xf32, #tpu.memory_space<vmem>>, vector<8x32xf32>,
    %181 = vector.shape_cast %179 : vector<8x1xf32> to vector<8x1xf32>
    %182 = vector.broadcast %181 : vector<8x1xf32> to vector<8x128xf32>
    %c0_51 = arith.constant 0 : index
    %c0_52 = arith.constant 0 : index
    %183 = vector.load %arg8[%c0_51, %c0_52] : memref<8x128xf32, #tpu.memory_space<vmem>>, vector<8x128xf32>
    tpu.vector_store %arg8[%c0_51, %c0_52], %182 {strides = array<i32>} : memref<8x128xf32, #tpu.memory_space<vmem>>, vector<8x128xf32>,
    return
  }
  func.func @transform_0(%arg0: i32) -> i32 {
    %c0_i32 = arith.constant 0 : i32
    %c0_i32_0 = arith.constant 0 : i32
    return %c0_i32 : i32
  }
  func.func @transform_1(%arg0: i32) -> (i32, i32, i32) {
    %c0_i32 = arith.constant 0 : i32
    %c0_i32_0 = arith.constant 0 : i32
    %c0_i32_1 = arith.constant 0 : i32
    %c0_i32_2 = arith.constant 0 : i32
    return %c0_i32, %c0_i32_0, %c0_i32_1 : i32, i32, i32
  }
  func.func @transform_2(%arg0: i32) -> (i32, i32) {
    %c0_i32 = arith.constant 0 : i32
    %c0_i32_0 = arith.constant 0 : i32
    return %arg0, %c0_i32 : i32, i32
  }
  func.func @transform_3(%arg0: i32) -> (i32, i32) {
    %c0_i32 = arith.constant 0 : i32
    %c0_i32_0 = arith.constant 0 : i32
    %c0_i32_1 = arith.constant 0 : i32
    return %c0_i32, %c0_i32_0 : i32, i32
  }
  func.func @transform_4(%arg0: i32) -> (i32, i32) {
    %c0_i32 = arith.constant 0 : i32
    %c0_i32_0 = arith.constant 0 : i32
    %c0_i32_1 = arith.constant 0 : i32
    return %c0_i32, %c0_i32_0 : i32, i32
  }
  func.func @transform_5(%arg0: i32) -> (i32, i32) {
    %c0_i32 = arith.constant 0 : i32
    %c0_i32_0 = arith.constant 0 : i32
    %c0_i32_1 = arith.constant 0 : i32
    return %c0_i32, %c0_i32_0 : i32, i32
  }
  func.func @transform_6(%arg0: i32) -> (i32, i32) {
    %c0_i32 = arith.constant 0 : i32
    %c0_i32_0 = arith.constant 0 : i32
    return %arg0, %c0_i32 : i32, i32
  }
  func.func @transform_7(%arg0: i32) -> (i32, i32) {
    %c0_i32 = arith.constant 0 : i32
    %c0_i32_0 = arith.constant 0 : i32
    return %arg0, %c0_i32 : i32, i32
  }
}

</mosaic_0001>

<bundles_post_ra>
// kernel: tpu_custom_call.1
= control target key start
LH: loop header
LB: loop body
LE: loop exit
PB: predicated region body
PF: predicated region fallthrough
CT: control target
= control target key end

     0   :  { %13 = vsyncpa [#allocation4], 0  ;;  %s1525_s0 = inlined_call_operand.vmem [shape: f32[7], index: 0, kind: input, shape index: {}]   ;;  %s1526_s1 = inlined_call_operand.vmem [shape: f32[7,1,64], index: 1, kind: input, shape index: {}]   ;;  %s1527_s2 = inlined_call_operand.vmem [shape: f32[8,32], index: 2, kind: input, shape index: {}]   ;;  %s1528_s3 = inlined_call_operand.vmem [shape: bf16[32,64], index: 3, kind: input, shape index: {}]   ;;  %s1529_s4 = inlined_call_operand.vmem [shape: bf16[64,32], index: 4, kind: input, shape index: {}]   ;;  %s1530_s5 = inlined_call_operand.vmem [shape: f32[1,32], index: 5, kind: input, shape index: {}]   ;;  %s1531_s6 = inlined_call_operand.hbm [shape: f32[8,32], index: 6, kind: output, shape index: {0}]   ;;  %s1532_s7 = inlined_call_operand.hbm [shape: f32[8,128], index: 7, kind: output, shape index: {1}]  }
   0x1   :  { %14 = vsyncpa [#allocation3], 0 }
   0x2   :  { %15 = vsyncpa [#allocation7], 0  ;;  %s22_s26 = sshll.u32 %s1525_s0, 4  ;;  %s23_s26 = int_to_ptr.vmem [resolvable:$true] %s22_s26 }
   0x3   :  { %s1146_s27 = scalar_lea.vmem %s23_s26, 16  ;;  %p1151_p1 = scmp.lt.s32.totalorder %s23_s26, %s23_s26 }
   0x4   :  { %p1147_p0 = scmp.ne.s32.totalorder %s23_s26, %s1146_s27  ;;  %p1152_p2 = scmp.lt.s32.totalorder %s1146_s27, %s1146_s27 }
   0x6   :  { %p1153_p3 = por %p1152_p2, %p1151_p1 }
   0x8   :  { %p1154_p4 = pnand %p1153_p3, %p1147_p0 }
   0xa   :  { %1157 = shalt.err (!%p1154_p4)
}
   0xb   :  { %s1208_s28 = smov [#allocation2]  }
   0xc   :  { %25 = dma.vmem_to_smem %s23_s26, 16, %s1208_s28, [#allocation4]  }
   0xd   :  { %1202 = dma.done.wait [#allocation4], 16  }
   0xe   :  { %1203 = vsyncadd [#allocation4], 4294967280 }
   0xf   :  { %39 = sfence }
  0x10   :  { %v1259_v0 = vld [vmem:[%s1528_s3] sm:$0xff]   ;;  %v1209_v1 = vmov 0.0   ;;  %v1267_v2 = vld [vmem:[%s1528_s3 + $0x8] sm:$0xff]   ;;  %vm1210_vm0 = vmmov 0   ;;  %vm76_vm1 = vcmask 261120   ;;  %v1303_v7 = vld [vmem:[%s1529_s4 + $0x10] sm:$0xff]  }
  0x11   :  { %981 = vmatprep.subr.bf16.mxu0 %v1209_v1  ;;  %989 = vmatprep.subr.bf16.mxu1 %v1209_v1  ;;  %v41_v3 = vld [vmem:[%s1527_s2] sm:$0xff]  ;;  %v1296_v6 = vld [vmem:[%s1529_s4 + $0x8] sm:$0xff]   ;;  %v1310_v8 = vld [vmem:[%s1529_s4 + $0x18] sm:$0xff]   ;;  %vm152_vm2 = vcmask 523264   ;;  %s1357_s22 = sld [smem:[#allocation2 + $0x1]]  ;;  %s1385_s25 = sld [smem:[#allocation2 + $0x2]] }
  0x12   :  { %982 = vmatpush3.bf16.msra.mxu0 %v1259_v0  ;;  %985 = vmatprep.mubr.msk.bf16.mxu0 %vm1210_vm0, %v1209_v1  ;;  %v57_v4 = vpack.c.bf16 %v41_v3, %v41_v3  ;;  %v1289_v5 = vld [vmem:[%s1529_s4] sm:$0xff]   ;;  %s1324_s4 = sld [smem:[#allocation2]]  ;;  %s1413_s28 = sld [smem:[#allocation2 + $0x3]] }
  0x13   :  { %983 = vmatprep.subr.bf16.mxu0 %v1209_v1  ;;  %997 = vmatprep.mubr.msk.bf16.mxu1 %vm1210_vm0, %v1209_v1  ;;  %v885_v9 = vld [vmem:[%s1526_s1] ss:$0 sm:$0xff]  ;;  %v897_v29 = vld [vmem:[%s1526_s1 + $0x1] ss:$0 sm:$0xff]  ;;  %v902_v48 = vld [vmem:[%s1526_s1 + $0x2] ss:$0 sm:$0xff] }
  0x14   :  { %990 = vmatpush3.bf16.msra.mxu1 %v1289_v5  ;;  %v1329_v17 = vld [vmem:[%s1530_s5] ss:$0 sm:$0xff]  ;;  %s1441_s0 = sld [smem:[#allocation2 + $0x4]]  ;;  %s1462_s10 = sld [smem:[#allocation2 + $0x5]] }
  0x15   :  { %991 = vmatprep.subr.bf16.mxu1 %v1209_v1  ;;  %s1483_s11 = sld [smem:[#allocation2 + $0x6]] }
  0x16   :  { %984 = vmatpush3.bf16.msra.mxu0 %v1267_v2 }
  0x17   :  { %1001 = vmatprep.subr.bf16.mxu0 %v1209_v1  ;;  %v309_v38 = vstv %s1357_s22  ;;  %v417_v57 = vstv %s1385_s25 }
  0x18   :  { %992 = vmatpush3.bf16.msra.mxu1 %v1296_v6  ;;  %v201_v19 = vstv %s1324_s4 }
  0x19   :  { %986 = vmatmul.mubr.msk.bf16.vlgmr.msra.gmra.mrb[0].mxu0 %vm76_vm1, %v57_v4  ;;  %993 = vmatprep.subr.bf16.mxu1 %v1209_v1 }
  0x1a   :  { %1002 = vmatpush3.bf16.msra.mxu0 %v1259_v0  ;;  %1005 = vmatprep.mubr.msk.bf16.mxu0 %vm1210_vm0, %v1209_v1 }
  0x1b   :  { %1003 = vmatprep.subr.bf16.mxu0 %v1209_v1 }
  0x1c   :  { %994 = vmatpush3.bf16.msra.mxu1 %v1303_v7 }
  0x1d   :  { %995 = vmatprep.subr.bf16.mxu1 %v1209_v1 }
  0x1e   :  { %1004 = vmatpush3.bf16.msra.mxu0 %v1267_v2 }
  0x1f   :  { %1009 = vmatprep.subr.bf16.mxu0 %v1209_v1 }
  0x20   :  { %996 = vmatpush3.bf16.msra.mxu1 %v1310_v8 }
  0x21   :  { %1021 = vmatprep.subr.bf16.mxu1 %v1209_v1 }
  0xec   :  { %v114_v10 = vpop.f32.mrb[0].mxu0 }
  0xed   :  { %v115_v11 = vadd.f32 %v885_v9, %v114_v10  ;;  %v987_v12 = vpop.f32.mrb[1].mxu0  ;;  %v907_v10 = vld [vmem:[%s1526_s1 + $0x3] ss:$0 sm:$0xff] }
  0xee   :  { %v117_v13 = vpop.f32.mrb[2].mxu0 }
  0xef   :  { %1132 = vtanh.f32 %v115_v11  ;;  %v988_v14 = vpop.f32.mrb[3].mxu0 }
  0xf9   :  { %v1133_v15 = vpop.eup %1132 }
  0xfa   :  { %v121_v16 = vpack.c.bf16 %v1133_v15, %v1133_v15 }
  0xfc   :  { %998 = vmatmul.mubr.msk.bf16.vlgmr.msra.gmra.mrb[0].mxu1 %vm152_vm2, %v121_v16 }
  0xfd   :  { %1022 = vmatpush3.bf16.msra.mxu1 %v1259_v0  ;;  %1025 = vmatprep.mubr.msk.bf16.mxu1 %vm1210_vm0, %v1209_v1 }
  0xfe   :  { %1023 = vmatprep.subr.bf16.mxu1 %v1209_v1 }
 0x101   :  { %1024 = vmatpush3.bf16.msra.mxu1 %v1267_v2 }
 0x102   :  { %1029 = vmatprep.subr.bf16.mxu1 %v1209_v1 }
 0x1cf   :  { %v190_v18 = vpop.f32.mrb[0].mxu1 }
 0x1d0   :  { %v191_v20 = vadd.f32 %v1329_v17, %v190_v18  ;;  %v999_v21 = vpop.f32.mrb[1].mxu1 }
 0x1d1   :  { %v193_v22 = vpop.f32.mrb[2].mxu1  ;;  %v525_v21 = vstv %s1413_s28 }
 0x1d2   :  { %v202_v23 = vmul.f32 %v201_v19, %v191_v20  ;;  %v1000_v24 = vpop.f32.mrb[3].mxu1  ;;  %v196_v25 = vmul.f32 %v191_v20, %v191_v20 }
 0x1d4   :  { %v203_v26 = vadd.f32 %v202_v23, %v41_v3  ;;  %v197_v27 = vsel %vm76_vm1, %v196_v25, 0.0 }
 0x1d5   :  { %198 = vadd.xlane.f32.xlu0 %v197_v27 }
 0x1d6   :  { %v209_v28 = vpack.c.bf16 %v203_v26, %v203_v26 }
 0x1d8   :  { %1006 = vmatmul.mubr.msk.bf16.vlgmr.msra.gmra.mrb[4].mxu0 %vm76_vm1, %v209_v28 }
 0x1d9   :  { %1010 = vmatpush3.bf16.msra.mxu0 %v1289_v5  ;;  %1017 = vmatprep.mubr.msk.bf16.mxu0 %vm1210_vm0, %v1209_v1 }
 0x1da   :  { %1011 = vmatprep.subr.bf16.mxu0 %v1209_v1 }
 0x1dd   :  { %1012 = vmatpush3.bf16.msra.mxu0 %v1296_v6 }
 0x1de   :  { %1013 = vmatprep.subr.bf16.mxu0 %v1209_v1 }
 0x1e1   :  { %1014 = vmatpush3.bf16.msra.mxu0 %v1303_v7 }
 0x1e2   :  { %1015 = vmatprep.subr.bf16.mxu0 %v1209_v1 }
 0x1e5   :  { %1016 = vmatpush3.bf16.msra.mxu0 %v1310_v8 }
 0x1e6   :  { %1041 = vmatprep.subr.bf16.mxu0 %v1209_v1 }
 0x2ab   :  { %v253_v30 = vpop.f32.mrb[4].mxu0 }
 0x2ac   :  { %v254_v31 = vadd.f32 %v897_v29, %v253_v30  ;;  %v1007_v32 = vpop.f32.mrb[5].mxu0 }
 0x2ad   :  { %v256_v33 = vpop.f32.mrb[6].mxu0 }
 0x2ae   :  { %1134 = vtanh.f32 %v254_v31  ;;  %v1008_v34 = vpop.f32.mrb[7].mxu0  ;;  %v912_v31 = vld [vmem:[%s1526_s1 + $0x4] ss:$0 sm:$0xff] }
 0x2b8   :  { %v1135_v35 = vpop.eup %1134 }
 0x2b9   :  { %v260_v36 = vpack.c.bf16 %v1135_v35, %v1135_v35 }
 0x2bb   :  { %1018 = vmatmul.mubr.msk.bf16.vlgmr.msra.gmra.mrb[8].mxu0 %vm152_vm2, %v260_v36 }
 0x2bc   :  { %1042 = vmatpush3.bf16.msra.mxu0 %v1259_v0  ;;  %1045 = vmatprep.mubr.msk.bf16.mxu0 %vm1210_vm0, %v1209_v1 }
 0x2bd   :  { %1043 = vmatprep.subr.bf16.mxu0 %v1209_v1 }
 0x2c0   :  { %1044 = vmatpush3.bf16.msra.mxu0 %v1267_v2 }
 0x2c1   :  { %1049 = vmatprep.subr.bf16.mxu0 %v1209_v1 }
 0x38e   :  { %v298_v37 = vpop.f32.mrb[8].mxu0 }
 0x38f   :  { %v299_v39 = vadd.f32 %v1329_v17, %v298_v37  ;;  %v1019_v40 = vpop.f32.mrb[9].mxu0 }
 0x390   :  { %v301_v41 = vpop.f32.mrb[10].mxu0 }
 0x391   :  { %v310_v42 = vmul.f32 %v309_v38, %v299_v39  ;;  %v1020_v43 = vpop.f32.mrb[11].mxu0  ;;  %v304_v44 = vmul.f32 %v299_v39, %v299_v39  ;;  %v633_v41 = vstv %s1441_s0 }
 0x393   :  { %v311_v45 = vadd.f32 %v310_v42, %v203_v26  ;;  %v305_v46 = vsel %vm76_vm1, %v304_v44, 0.0 }
 0x394   :  { %306 = vadd.xlane.f32.xlu0 %v305_v46 }
 0x395   :  { %v317_v47 = vpack.c.bf16 %v311_v45, %v311_v45 }
 0x397   :  { %1026 = vmatmul.mubr.msk.bf16.vlgmr.msra.gmra.mrb[4].mxu1 %vm76_vm1, %v317_v47 }
 0x398   :  { %1030 = vmatpush3.bf16.msra.mxu1 %v1289_v5  ;;  %1037 = vmatprep.mubr.msk.bf16.mxu1 %vm1210_vm0, %v1209_v1 }
 0x399   :  { %1031 = vmatprep.subr.bf16.mxu1 %v1209_v1 }
 0x39c   :  { %1032 = vmatpush3.bf16.msra.mxu1 %v1296_v6 }
 0x39d   :  { %1033 = vmatprep.subr.bf16.mxu1 %v1209_v1 }
 0x3a0   :  { %1034 = vmatpush3.bf16.msra.mxu1 %v1303_v7 }
 0x3a1   :  { %1035 = vmatprep.subr.bf16.mxu1 %v1209_v1 }
 0x3a4   :  { %1036 = vmatpush3.bf16.msra.mxu1 %v1310_v8 }
 0x3a5   :  { %1061 = vmatprep.subr.bf16.mxu1 %v1209_v1 }
 0x46a   :  { %v361_v49 = vpop.f32.mrb[4].mxu1 }
 0x46b   :  { %v362_v50 = vadd.f32 %v902_v48, %v361_v49  ;;  %v1027_v51 = vpop.f32.mrb[5].mxu1  ;;  %v917_v49 = vld [vmem:[%s1526_s1 + $0x5] ss:$0 sm:$0xff] }
 0x46c   :  { %v364_v52 = vpop.f32.mrb[6].mxu1 }
 0x46d   :  { %1136 = vtanh.f32 %v362_v50  ;;  %v1028_v53 = vpop.f32.mrb[7].mxu1 }
 0x477   :  { %v1137_v54 = vpop.eup %1136 }
 0x478   :  { %v368_v55 = vpack.c.bf16 %v1137_v54, %v1137_v54 }
 0x47a   :  { %1038 = vmatmul.mubr.msk.bf16.vlgmr.msra.gmra.mrb[8].mxu1 %vm152_vm2, %v368_v55 }
 0x47b   :  { %1062 = vmatpush3.bf16.msra.mxu1 %v1259_v0  ;;  %1065 = vmatprep.mubr.msk.bf16.mxu1 %vm1210_vm0, %v1209_v1 }
 0x47c   :  { %1063 = vmatprep.subr.bf16.mxu1 %v1209_v1 }
 0x47f   :  { %1064 = vmatpush3.bf16.msra.mxu1 %v1267_v2 }
 0x480   :  { %1069 = vmatprep.subr.bf16.mxu1 %v1209_v1 }
 0x54d   :  { %v406_v56 = vpop.f32.mrb[8].mxu1 }
 0x54e   :  { %v407_v58 = vadd.f32 %v1329_v17, %v406_v56  ;;  %v1039_v59 = vpop.f32.mrb[9].mxu1 }
 0x54f   :  { %v409_v60 = vpop.f32.mrb[10].mxu1  ;;  %v741_v59 = vstv %s1462_s10 }
 0x550   :  { %v418_v61 = vmul.f32 %v417_v57, %v407_v58  ;;  %v1040_v62 = vpop.f32.mrb[11].mxu1  ;;  %v412_v63 = vmul.f32 %v407_v58, %v407_v58 }
 0x552   :  { %v419_v3 = vadd.f32 %v418_v61, %v311_v45  ;;  %v413_v4 = vsel %vm76_vm1, %v412_v63, 0.0 }
 0x553   :  { %414 = vadd.xlane.f32.xlu1 %v413_v4 }
 0x554   :  { %v425_v9 = vpack.c.bf16 %v419_v3, %v419_v3 }
 0x556   :  { %1046 = vmatmul.mubr.msk.bf16.vlgmr.msra.gmra.mrb[12].mxu0 %vm76_vm1, %v425_v9 }
 0x557   :  { %1050 = vmatpush3.bf16.msra.mxu0 %v1289_v5  ;;  %1057 = vmatprep.mubr.msk.bf16.mxu0 %vm1210_vm0, %v1209_v1 }
 0x558   :  { %1051 = vmatprep.subr.bf16.mxu0 %v1209_v1 }
 0x55b   :  { %1052 = vmatpush3.bf16.msra.mxu0 %v1296_v6 }
 0x55c   :  { %1053 = vmatprep.subr.bf16.mxu0 %v1209_v1 }
 0x55f   :  { %1054 = vmatpush3.bf16.msra.mxu0 %v1303_v7 }
 0x560   :  { %1055 = vmatprep.subr.bf16.mxu0 %v1209_v1 }
 0x563   :  { %1056 = vmatpush3.bf16.msra.mxu0 %v1310_v8 }
 0x564   :  { %1081 = vmatprep.subr.bf16.mxu0 %v1209_v1 }
 0x629   :  { %v469_v11 = vpop.f32.mrb[12].mxu0 }
 0x62a   :  { %v470_v12 = vadd.f32 %v907_v10, %v469_v11  ;;  %v1047_v13 = vpop.f32.mrb[13].mxu0 }
 0x62b   :  { %v472_v14 = vpop.f32.mrb[14].mxu0 }
 0x62c   :  { %1138 = vtanh.f32 %v470_v12  ;;  %v1048_v15 = vpop.f32.mrb[15].mxu0  ;;  %v922_v12 = vld [vmem:[%s1526_s1 + $0x6] ss:$0 sm:$0xff]  ;;  %s1211_s1 = smov [#allocation5]  }
 0x62d   :  { %s862_s12 = sshll.u32 %s1211_s1, 4  ;;  %s863_s12 = int_to_ptr.vmem [resolvable:$true] %s862_s12 }
 0x62e   :  { %s1158_s13 = scalar_lea.vmem %s863_s12, 128  ;;  %p1163_p6 = scmp.lt.s32.totalorder %s863_s12, %s863_s12 }
 0x62f   :  { %p1159_p5 = scmp.ne.s32.totalorder %s863_s12, %s1158_s13  ;;  %p1164_p7 = scmp.lt.s32.totalorder %s1158_s13, %s1158_s13 }
 0x631   :  { %p1165_p8 = por %p1164_p7, %p1163_p6 }
 0x633   :  { %p1166_p9 = pnand %p1165_p8, %p1159_p5 }
 0x636   :  { %v1139_v16 = vpop.eup %1138 }
 0x637   :  { %v476_v18 = vpack.c.bf16 %v1139_v16, %v1139_v16 }
 0x639   :  { %1058 = vmatmul.mubr.msk.bf16.vlgmr.msra.gmra.mrb[16].mxu0 %vm152_vm2, %v476_v18 }
 0x63a   :  { %1082 = vmatpush3.bf16.msra.mxu0 %v1259_v0  ;;  %1085 = vmatprep.mubr.msk.bf16.mxu0 %vm1210_vm0, %v1209_v1 }
 0x63b   :  { %1083 = vmatprep.subr.bf16.mxu0 %v1209_v1 }
 0x63e   :  { %1084 = vmatpush3.bf16.msra.mxu0 %v1267_v2 }
 0x63f   :  { %1089 = vmatprep.subr.bf16.mxu0 %v1209_v1 }
 0x70c   :  { %v514_v20 = vpop.f32.mrb[16].mxu0 }
 0x70d   :  { %v515_v22 = vadd.f32 %v1329_v17, %v514_v20  ;;  %v1059_v23 = vpop.f32.mrb[17].mxu0 }
 0x70e   :  { %v517_v24 = vpop.f32.mrb[18].mxu0 }
 0x70f   :  { %v526_v25 = vmul.f32 %v525_v21, %v515_v22  ;;  %v1060_v26 = vpop.f32.mrb[19].mxu0  ;;  %v520_v27 = vmul.f32 %v515_v22, %v515_v22 }
 0x711   :  { %v527_v28 = vadd.f32 %v526_v25, %v419_v3  ;;  %v521_v29 = vsel %vm76_vm1, %v520_v27, 0.0 }
 0x712   :  { %522 = vadd.xlane.f32.xlu1 %v521_v29 }
 0x713   :  { %v533_v30 = vpack.c.bf16 %v527_v28, %v527_v28 }
 0x715   :  { %1066 = vmatmul.mubr.msk.bf16.vlgmr.msra.gmra.mrb[12].mxu1 %vm76_vm1, %v533_v30 }
 0x716   :  { %1070 = vmatpush3.bf16.msra.mxu1 %v1289_v5  ;;  %1077 = vmatprep.mubr.msk.bf16.mxu1 %vm1210_vm0, %v1209_v1 }
 0x717   :  { %1071 = vmatprep.subr.bf16.mxu1 %v1209_v1 }
 0x71a   :  { %1072 = vmatpush3.bf16.msra.mxu1 %v1296_v6 }
 0x71b   :  { %1073 = vmatprep.subr.bf16.mxu1 %v1209_v1 }
 0x71e   :  { %1074 = vmatpush3.bf16.msra.mxu1 %v1303_v7 }
 0x71f   :  { %1075 = vmatprep.subr.bf16.mxu1 %v1209_v1 }
 0x722   :  { %1076 = vmatpush3.bf16.msra.mxu1 %v1310_v8 }
 0x723   :  { %1101 = vmatprep.subr.bf16.mxu1 %v1209_v1 }
 0x7e8   :  { %v577_v32 = vpop.f32.mrb[12].mxu1 }
 0x7e9   :  { %v578_v33 = vadd.f32 %v912_v31, %v577_v32  ;;  %v1067_v34 = vpop.f32.mrb[13].mxu1 }
 0x7ea   :  { %v580_v35 = vpop.f32.mrb[14].mxu1 }
 0x7eb   :  { %1140 = vtanh.f32 %v578_v33  ;;  %v1068_v36 = vpop.f32.mrb[15].mxu1 }
 0x7f5   :  { %v1141_v37 = vpop.eup %1140 }
 0x7f6   :  { %v584_v39 = vpack.c.bf16 %v1141_v37, %v1141_v37 }
 0x7f8   :  { %1078 = vmatmul.mubr.msk.bf16.vlgmr.msra.gmra.mrb[16].mxu1 %vm152_vm2, %v584_v39 }
 0x7f9   :  { %1102 = vmatpush3.bf16.msra.mxu1 %v1259_v0  ;;  %1105 = vmatprep.mubr.msk.bf16.mxu1 %vm1210_vm0, %v1209_v1 }
 0x7fa   :  { %1103 = vmatprep.subr.bf16.mxu1 %v1209_v1 }
 0x7fd   :  { %1104 = vmatpush3.bf16.msra.mxu1 %v1267_v2 }
 0x7fe   :  { %1109 = vmatprep.subr.bf16.mxu1 %v1209_v1 }
 0x8cb   :  { %v622_v40 = vpop.f32.mrb[16].mxu1 }
 0x8cc   :  { %v623_v42 = vadd.f32 %v1329_v17, %v622_v40  ;;  %v1079_v43 = vpop.f32.mrb[17].mxu1 }
 0x8cd   :  { %v625_v44 = vpop.f32.mrb[18].mxu1 }
 0x8ce   :  { %v634_v0 = vmul.f32 %v633_v41, %v623_v42  ;;  %v1080_v45 = vpop.f32.mrb[19].mxu1  ;;  %v628_v46 = vmul.f32 %v623_v42, %v623_v42 }
 0x8d0   :  { %v635_v47 = vadd.f32 %v634_v0, %v527_v28  ;;  %v629_v48 = vsel %vm76_vm1, %v628_v46, 0.0 }
 0x8d1   :  { %630 = vadd.xlane.f32.xlu0 %v629_v48 }
 0x8d2   :  { %v641_v2 = vpack.c.bf16 %v635_v47, %v635_v47 }
 0x8d4   :  { %1086 = vmatmul.mubr.msk.bf16.vlgmr.msra.gmra.mrb[20].mxu0 %vm76_vm1, %v641_v2 }
 0x8d5   :  { %1090 = vmatpush3.bf16.msra.mxu0 %v1289_v5  ;;  %1097 = vmatprep.mubr.msk.bf16.mxu0 %vm1210_vm0, %v1209_v1 }
 0x8d6   :  { %1091 = vmatprep.subr.bf16.mxu0 %v1209_v1 }
 0x8d9   :  { %1092 = vmatpush3.bf16.msra.mxu0 %v1296_v6 }
 0x8da   :  { %1093 = vmatprep.subr.bf16.mxu0 %v1209_v1 }
 0x8dd   :  { %1094 = vmatpush3.bf16.msra.mxu0 %v1303_v7 }
 0x8de   :  { %1095 = vmatprep.subr.bf16.mxu0 %v1209_v1 }
 0x8e1   :  { %1096 = vmatpush3.bf16.msra.mxu0 %v1310_v8 }
 0x9a7   :  { %v685_v50 = vpop.f32.mrb[20].mxu0 }
 0x9a8   :  { %v686_v51 = vadd.f32 %v917_v49, %v685_v50  ;;  %v1087_v52 = vpop.f32.mrb[21].mxu0 }
 0x9a9   :  { %v688_v53 = vpop.f32.mrb[22].mxu0 }
 0x9aa   :  { %1142 = vtanh.f32 %v686_v51  ;;  %v1088_v54 = vpop.f32.mrb[23].mxu0 }
 0x9b4   :  { %v1143_v55 = vpop.eup %1142 }
 0x9b5   :  { %v692_v56 = vpack.c.bf16 %v1143_v55, %v1143_v55 }
 0x9b7   :  { %1098 = vmatmul.mubr.msk.bf16.vlgmr.msra.gmra.mrb[24].mxu0 %vm152_vm2, %v692_v56 }
 0xa8a   :  { %v730_v58 = vpop.f32.mrb[24].mxu0 }
 0xa8b   :  { %v731_v60 = vadd.f32 %v1329_v17, %v730_v58  ;;  %v1099_v61 = vpop.f32.mrb[25].mxu0 }
 0xa8c   :  { %v733_v62 = vpop.f32.mrb[26].mxu0 }
 0xa8d   :  { %v742_v63 = vmul.f32 %v741_v59, %v731_v60  ;;  %v1100_v3 = vpop.f32.mrb[27].mxu0  ;;  %v736_v4 = vmul.f32 %v731_v60, %v731_v60 }
 0xa8f   :  { %v743_v9 = vadd.f32 %v742_v63, %v635_v47  ;;  %v737_v10 = vsel %vm76_vm1, %v736_v4, 0.0 }
 0xa90   :  { %738 = vadd.xlane.f32.xlu1 %v737_v10 }
 0xa91   :  { %v749_v11 = vpack.c.bf16 %v743_v9, %v743_v9 }
 0xa93   :  { %1106 = vmatmul.mubr.msk.bf16.vlgmr.msra.gmra.mrb[20].mxu1 %vm76_vm1, %v749_v11 }
 0xa94   :  { %1110 = vmatpush3.bf16.msra.mxu1 %v1289_v5  ;;  %1117 = vmatprep.mubr.msk.bf16.mxu1 %vm1210_vm0, %v1209_v1 }
 0xa95   :  { %1111 = vmatprep.subr.bf16.mxu1 %v1209_v1 }
 0xa98   :  { %1112 = vmatpush3.bf16.msra.mxu1 %v1296_v6 }
 0xa99   :  { %1113 = vmatprep.subr.bf16.mxu1 %v1209_v1 }
 0xa9c   :  { %1114 = vmatpush3.bf16.msra.mxu1 %v1303_v7  ;;  %v849_v7 = vstv %s1483_s11 }
 0xa9d   :  { %1115 = vmatprep.subr.bf16.mxu1 %v1209_v1 }
 0xaa0   :  { %1116 = vmatpush3.bf16.msra.mxu1 %v1310_v8 }
 0xb66   :  { %v793_v5 = vpop.f32.mrb[20].mxu1 }
 0xb67   :  { %v794_v13 = vadd.f32 %v922_v12, %v793_v5  ;;  %v1107_v14 = vpop.f32.mrb[21].mxu1 }
 0xb68   :  { %v796_v15 = vpop.f32.mrb[22].mxu1 }
 0xb69   :  { %1144 = vtanh.f32 %v794_v13  ;;  %v1108_v16 = vpop.f32.mrb[23].mxu1 }
 0xb73   :  { %v1145_v18 = vpop.eup %1144 }
 0xb74   :  { %v800_v6 = vpack.c.bf16 %v1145_v18, %v1145_v18 }
 0xb76   :  { %1118 = vmatmul.mubr.msk.bf16.vlgmr.msra.gmra.mrb[24].mxu1 %vm152_vm2, %v800_v6 }
 0xc49   :  { %v838_v1 = vpop.f32.mrb[24].mxu1 }
 0xc4a   :  { %v839_v8 = vadd.f32 %v1329_v17, %v838_v1  ;;  %v1119_v20 = vpop.f32.mrb[25].mxu1 }
 0xc4b   :  { %v841_v22 = vpop.f32.mrb[26].mxu1 }
 0xc4c   :  { %v850_v23 = vmul.f32 %v849_v7, %v839_v8  ;;  %v1120_v24 = vpop.f32.mrb[27].mxu1  ;;  %v844_v25 = vmul.f32 %v839_v8, %v839_v8 }
 0xc4e   :  { %v845_v26 = vsel %vm76_vm1, %v844_v25, 0.0  ;;  %v851_v27 = vadd.f32 %v850_v23, %v743_v9 }
 0xc4f   :  { %846 = vadd.xlane.f32.xlu0 %v845_v26 }
 0xc50   :  { %854 = vst.msk [vmem:[#allocation5] sm:$0xff] %vm76_vm1, %v851_v27 }
 0xc51   :  { %1169 = shalt.err (!%p1166_p9)
}
 0xc52   :  { %s1170_s16 = scalar_lea.hbm %s1531_s6, 128 }
 0xc53   :  { %p1171_p10 = scmp.ne.s32.totalorder %s1531_s6, %s1170_s16  ;;  %p1174_p11 = scmp.lt.u32.totalorder %s1170_s16, %s1531_s6 }
 0xc55   :  { %p1176_p12 = pnand %p1174_p11, %p1171_p10 }
 0xc57   :  { %1179 = shalt.err (!%p1176_p12)
}
 0xc58   :  { %865 = dma.vmem_to_hbm [thread:$0]  %s863_s12, 128, %s1531_s6, [#allocation3]   ;;  %v199_v17 = vpop.xlane.xlu0 %198  ;;  %v415_v29 = vpop.xlane.xlu1 %414 }
 0xc59   :  { %v200_v32 = vmul.f32 0.5, %v199_v17  ;;  %v416_v33 = vmul.f32 0.5, %v415_v29  ;;  %s1212_s6 = smov [#allocation6]  }
 0xc5a   :  { %s872_s22 = sshll.u32 %s1212_s6, 4  ;;  %s873_s22 = int_to_ptr.vmem [resolvable:$true] %s872_s22 }
 0xc5b   :  { %v204_v39 = vmul.f32 %v201_v19, %v200_v32  ;;  %v420_v40 = vmul.f32 %v417_v57, %v416_v33  ;;  %s1180_s4 = scalar_lea.vmem %s873_s22, 128  ;;  %p1185_p0 = scmp.lt.s32.totalorder %s873_s22, %s873_s22 }
 0xc5c   :  { %v307_v28 = vpop.xlane.xlu0 %306  ;;  %v523_v31 = vpop.xlane.xlu1 %522  ;;  %p1181_p13 = scmp.ne.s32.totalorder %s873_s22, %s1180_s4  ;;  %p1186_p1 = scmp.lt.s32.totalorder %s1180_s4, %s1180_s4 }
 0xc5d   :  { %v308_v30 = vmul.f32 0.5, %v307_v28  ;;  %v524_v36 = vmul.f32 0.5, %v523_v31 }
 0xc5e   :  { %p1187_p2 = por %p1186_p1, %p1185_p0 }
 0xc5f   :  { %v312_v35 = vmul.f32 %v309_v38, %v308_v30  ;;  %v528_v44 = vmul.f32 %v525_v21, %v524_v36 }
 0xc60   :  { %v631_v34 = vpop.xlane.xlu0 %630  ;;  %v739_v37 = vpop.xlane.xlu1 %738  ;;  %p1188_p3 = pnand %p1187_p2, %p1181_p13 }
 0xc61   :  { %v632_v42 = vmul.f32 0.5, %v631_v34  ;;  %v313_v43 = vadd.f32 %v312_v35, %v204_v39  ;;  %v740_v0 = vmul.f32 0.5, %v739_v37 }
 0xc63   :  { %v421_v45 = vadd.f32 %v420_v40, %v313_v43  ;;  %v636_v46 = vmul.f32 %v633_v41, %v632_v42  ;;  %v744_v48 = vmul.f32 %v741_v59, %v740_v0 }
 0xc65   :  { %v529_v47 = vadd.f32 %v528_v44, %v421_v45 }
 0xc67   :  { %v637_v49 = vadd.f32 %v636_v46, %v529_v47 }
 0xc69   :  { %v745_v19 = vadd.f32 %v744_v48, %v637_v49 }
 0xcdc   :  { %v847_v2 = vpop.xlane.xlu0 %846 }
 0xcdd   :  { %v848_v38 = vmul.f32 0.5, %v847_v2 }
 0xcdf   :  { %v852_v50 = vmul.f32 %v849_v7, %v848_v38 }
 0xce1   :  { %v853_v51 = vadd.f32 %v852_v50, %v745_v19 }
 0xce3   :  { %855 = vst [vmem:[#allocation6] sm:$0xff] %v853_v51 }
 0xce4   :  { %1191 = shalt.err (!%p1188_p3)
}
 0xce5   :  { %s1192_s25 = scalar_lea.hbm %s1532_s7, 128 }
 0xce6   :  { %p1193_p4 = scmp.ne.s32.totalorder %s1532_s7, %s1192_s25  ;;  %p1196_p5 = scmp.lt.u32.totalorder %s1192_s25, %s1532_s7 }
 0xce8   :  { %p1198_p6 = pnand %p1196_p5, %p1193_p4 }
 0xcea   :  { %1201 = shalt.err (!%p1198_p6)
}
 0xceb   :  { %875 = dma.vmem_to_hbm [thread:$0]  %s873_s22, 128, %s1532_s7, [#allocation7]  }
 0xcec   :  { %1204 = dma.done.wait [#allocation3], 128  }
 0xced   :  { %1205 = vsyncadd [#allocation3], 4294967168 }
 0xcee   :  { %1206 = dma.done.wait [#allocation7], 128  }
 0xcef   :  { %1207 = vsyncadd [#allocation7], 4294967168 }
 0xcf0   :  { %882 = vsyncpa [#allocation3], 1 }
 0xcf1   :  { %883 = vsyncpa [#allocation7], 1 }
 0xcf2   :  { %884 = vsyncpa [#allocation4], 1 }

</bundles_post_ra>
